<compile_context>
chip_gen: v6e
topology: v6e:2x2x1
jax: 0.10.0
libtpu: 0.0.40
codegen_flags: <defaults>
</compile_context>

<pallas_src>
import functools

import jax
import jax.numpy as jnp
from jax.experimental import pallas as pl
from jax.experimental.pallas import tpu as pltpu

N_OBS = 32      # n_observations
H1 = 100        # layer1 out
H2 = 70         # layer2 out
N_ACT = 8       # n_actions
BATCH = 2

LANE = 128
SUBLANE = 8


def _round_up(n, m):
    return ((n + m - 1) // m) * m


def dqn_kernel(x_ref, w1_ref, b1_ref, w2_ref, b2_ref, w3_ref, b3_ref, o_ref):
    # layer1 + ReLU  (MXU matmul, f32 accumulate; bias add / max are free VPU filler)
    h1 = jnp.dot(x_ref[...], w1_ref[...], preferred_element_type=jnp.float32)
    h1 = jnp.maximum(h1 + b1_ref[...], 0.0).astype(w2_ref.dtype)
    # layer2 + ReLU
    h2 = jnp.dot(h1, w2_ref[...], preferred_element_type=jnp.float32)
    h2 = jnp.maximum(h2 + b2_ref[...], 0.0).astype(w3_ref.dtype)
    # layer3 (no activation)
    out = jnp.dot(h2, w3_ref[...], preferred_element_type=jnp.float32)
    o_ref[...] = (out + b3_ref[...]).astype(o_ref.dtype)


@functools.partial(jax.jit, static_argnames=("block_b", "compute_dtype"))
def dqn_forward(x, w1, b1, w2, b2, w3, b3, *,
                block_b=256, compute_dtype=jnp.bfloat16):
    """Runs the fused DQN MLP. Weights stored (in, out); y = x @ W + b per layer."""
    B, n_obs = x.shape
    h1, h2, n_act = w1.shape[1], w2.shape[1], w3.shape[1]

    # --- lane-pad feature dims to multiples of 128 (zero fill keeps math exact) ---
    h1p, h2p, n_actp = (_round_up(d, LANE) for d in (h1, h2, n_act))

    def pad2(a, rows, cols):
        return jnp.pad(a, ((0, rows - a.shape[0]), (0, cols - a.shape[1])))

    w1p = pad2(w1, n_obs, h1p).astype(compute_dtype)
    w2p = pad2(w2, h1p, h2p).astype(compute_dtype)
    w3p = pad2(w3, h2p, n_actp).astype(compute_dtype)
    b1p = pad2(b1, 1, h1p)          # biases stay f32 (added to f32 accumulator)
    b2p = pad2(b2, 1, h2p)
    b3p = pad2(b3, 1, n_actp)

    # --- batch tile: multiple of 8 sublanes, capped at block_b ---
    tile_b = _round_up(min(block_b, _round_up(B, SUBLANE)), SUBLANE)
    b_pad = _round_up(B, tile_b)
    xp = jnp.pad(x, ((0, b_pad - B), (0, 0))).astype(compute_dtype)

    grid = (b_pad // tile_b,)
    x_spec = pl.BlockSpec((tile_b, n_obs), lambda i: (i, 0))
    out_spec = pl.BlockSpec((tile_b, n_actp), lambda i: (i, 0))

    def const_spec(shape):
        # Constant block index: weights/biases stay resident in VMEM across
        # all batch-grid steps (no per-step re-DMA).
        return pl.BlockSpec(shape, lambda i: (0, 0))

    out = pl.pallas_call(
        dqn_kernel,
        out_shape=jax.ShapeDtypeStruct((b_pad, n_actp), jnp.float32),
        grid=grid,
        in_specs=[
            x_spec,
            const_spec((n_obs, h1p)), const_spec((1, h1p)),
            const_spec((h1p, h2p)),  const_spec((1, h2p)),
            const_spec((h2p, n_actp)), const_spec((1, n_actp)),
        ],
        out_specs=out_spec,
        compiler_params=pltpu.CompilerParams(
            dimension_semantics=("parallel",)),   # batch axis -> both TCs on v7x
    )(xp, w1p, b1p, w2p, b2p, w3p, b3p)

    return out[:B, :n_act]


def init_linear_params(key, in_features, out_features):
    # PyTorch nn.Linear default init: U(-1/sqrt(in), 1/sqrt(in)) for weight and bias.
    kw, kb = jax.random.split(key)
    bound = 1.0 / jnp.sqrt(jnp.float32(in_features))
    # Stored as (in, out) so the kernel computes y = x @ W + b.
    w = jax.random.uniform(kw, (in_features, out_features), jnp.float32, -bound, bound)
    b = jax.random.uniform(kb, (1, out_features), jnp.float32, -bound, bound)
    return w, b


def dqn_reference(x, w1, b1, w2, b2, w3, b3):
    a1 = jnp.maximum(x @ w1 + b1, 0.0)
    a2 = jnp.maximum(a1 @ w2 + b2, 0.0)
    return a2 @ w3 + b3


if __name__ == "__main__":
    key = jax.random.PRNGKey(0)
    kx, k1, k2, k3 = jax.random.split(key, 4)

    x = jax.random.normal(kx, (BATCH, N_OBS), jnp.float32)
    w1, b1 = init_linear_params(k1, N_OBS, H1)
    w2, b2 = init_linear_params(k2, H1, H2)
    w3, b3 = init_linear_params(k3, H2, N_ACT)

    ref = dqn_reference(x, w1, b1, w2, b2, w3, b3)

    # f32 operand path (small batch, pads B=2 -> 8 sublanes, single grid step).
    out_f32 = jax.block_until_ready(
        dqn_forward(x, w1, b1, w2, b2, w3, b3, compute_dtype=jnp.float32))
    assert out_f32.shape == (BATCH, N_ACT), out_f32.shape
    assert jnp.allclose(out_f32, ref, atol=1e-3, rtol=1e-3), "f32 mismatch vs reference"

    # bf16 operand path (MXU-native on v6e/v7x), f32 accumulation / f32 biases.
    out_bf16 = jax.block_until_ready(
        dqn_forward(x, w1, b1, w2, b2, w3, b3, compute_dtype=jnp.bfloat16))
    assert out_bf16.shape == (BATCH, N_ACT), out_bf16.shape
    assert jnp.allclose(out_bf16, ref, atol=3e-2, rtol=3e-2), "bf16 mismatch vs reference"

    # Replay-buffer-sized batch: exercises the batch grid (2 tiles of 256 rows)
    # with the "parallel" axis and VMEM-resident weights.
    xb = jax.random.normal(jax.random.PRNGKey(1), (512, N_OBS), jnp.float32)
    refb = dqn_reference(xb, w1, b1, w2, b2, w3, b3)
    outb = jax.block_until_ready(
        dqn_forward(xb, w1, b1, w2, b2, w3, b3, compute_dtype=jnp.float32))
    assert outb.shape == (512, N_ACT), outb.shape
    assert jnp.allclose(outb, refb, atol=1e-3, rtol=1e-3), "batched mismatch vs reference"

    print("KERNEL_OK")
</pallas_src>

<mosaic_0001>
module attributes {stable_mosaic.version = 11 : i64} {
  func.func @dqn_kernel(%arg0: i32, %arg1: memref<8x32xf32, #tpu.memory_space<vmem>>, %arg2: memref<32x128xf32, #tpu.memory_space<vmem>>, %arg3: memref<1x128xf32, #tpu.memory_space<vmem>>, %arg4: memref<128x128xf32, #tpu.memory_space<vmem>>, %arg5: memref<1x128xf32, #tpu.memory_space<vmem>>, %arg6: memref<128x128xf32, #tpu.memory_space<vmem>>, %arg7: memref<1x128xf32, #tpu.memory_space<vmem>>, %arg8: memref<8x128xf32, #tpu.memory_space<vmem>>) attributes {dimension_semantics = [#tpu.dimension_semantics<parallel>], iteration_bounds = array<i64: 1>, scalar_prefetch = 0 : i64, scratch_operands = 0 : i64, tpu.core_type = #tpu.core_type<tc>, window_params = [{transform_indices = @transform_0, window_bounds = array<i64: 8, 32>}, {pipeline_mode = #tpu.pipeline_mode<synchronous>, transform_indices = @transform_1, window_bounds = array<i64: 32, 128>}, {pipeline_mode = #tpu.pipeline_mode<synchronous>, transform_indices = @transform_2, window_bounds = array<i64: 1, 128>}, {pipeline_mode = #tpu.pipeline_mode<synchronous>, transform_indices = @transform_3, window_bounds = array<i64: 128, 128>}, {pipeline_mode = #tpu.pipeline_mode<synchronous>, transform_indices = @transform_4, window_bounds = array<i64: 1, 128>}, {pipeline_mode = #tpu.pipeline_mode<synchronous>, transform_indices = @transform_5, window_bounds = array<i64: 128, 128>}, {pipeline_mode = #tpu.pipeline_mode<synchronous>, transform_indices = @transform_6, window_bounds = array<i64: 1, 128>}, {transform_indices = @transform_7, window_bounds = array<i64: 8, 128>}]} {
    %c0 = arith.constant 0 : index
    %c0_0 = arith.constant 0 : index
    %0 = vector.load %arg1[%c0, %c0_0] : memref<8x32xf32, #tpu.memory_space<vmem>>, vector<8x32xf32>
    %c0_1 = arith.constant 0 : index
    %c0_2 = arith.constant 0 : index
    %1 = vector.load %arg2[%c0_1, %c0_2] : memref<32x128xf32, #tpu.memory_space<vmem>>, vector<32x128xf32>
    %cst = arith.constant dense<0.000000e+00> : vector<8x128xf32>
    %2 = tpu.matmul %0, %1, %cst {dimension_numbers = #tpu.dot_dimension_numbers<[1], [0], [0], [1], [0, 0, 1, 1], [], []>} : vector<8x32xf32>, vector<32x128xf32>, vector<8x128xf32> -> vector<8x128xf32>
    %c0_3 = arith.constant 0 : index
    %c0_4 = arith.constant 0 : index
    %3 = vector.load %arg3[%c0_3, %c0_4] : memref<1x128xf32, #tpu.memory_space<vmem>>, vector<1x128xf32>
    %4 = vector.broadcast %3 : vector<1x128xf32> to vector<8x128xf32>
    %5 = arith.addf %2, %4 : vector<8x128xf32>
    %cst_5 = arith.constant 0.000000e+00 : f32
    %6 = vector.broadcast %cst_5 : f32 to vector<8x128xf32>
    %7 = arith.maximumf %5, %6 : vector<8x128xf32>
    %c0_6 = arith.constant 0 : index
    %c0_7 = arith.constant 0 : index
    %8 = vector.load %arg4[%c0_6, %c0_7] : memref<128x128xf32, #tpu.memory_space<vmem>>, vector<128x128xf32>
    %cst_8 = arith.constant dense<0.000000e+00> : vector<8x128xf32>
    %9 = tpu.matmul %7, %8, %cst_8 {dimension_numbers = #tpu.dot_dimension_numbers<[1], [0], [0], [1], [0, 0, 1, 1], [], []>} : vector<8x128xf32>, vector<128x128xf32>, vector<8x128xf32> -> vector<8x128xf32>
    %c0_9 = arith.constant 0 : index
    %c0_10 = arith.constant 0 : index
    %10 = vector.load %arg5[%c0_9, %c0_10] : memref<1x128xf32, #tpu.memory_space<vmem>>, vector<1x128xf32>
    %11 = vector.broadcast %10 : vector<1x128xf32> to vector<8x128xf32>
    %12 = arith.addf %9, %11 : vector<8x128xf32>
    %cst_11 = arith.constant 0.000000e+00 : f32
    %13 = vector.broadcast %cst_11 : f32 to vector<8x128xf32>
    %14 = arith.maximumf %12, %13 : vector<8x128xf32>
    %c0_12 = arith.constant 0 : index
    %c0_13 = arith.constant 0 : index
    %15 = vector.load %arg6[%c0_12, %c0_13] : memref<128x128xf32, #tpu.memory_space<vmem>>, vector<128x128xf32>
    %cst_14 = arith.constant dense<0.000000e+00> : vector<8x128xf32>
    %16 = tpu.matmul %14, %15, %cst_14 {dimension_numbers = #tpu.dot_dimension_numbers<[1], [0], [0], [1], [0, 0, 1, 1], [], []>} : vector<8x128xf32>, vector<128x128xf32>, vector<8x128xf32> -> vector<8x128xf32>
    %c0_15 = arith.constant 0 : index
    %c0_16 = arith.constant 0 : index
    %17 = vector.load %arg7[%c0_15, %c0_16] : memref<1x128xf32, #tpu.memory_space<vmem>>, vector<1x128xf32>
    %18 = vector.broadcast %17 : vector<1x128xf32> to vector<8x128xf32>
    %19 = arith.addf %16, %18 : vector<8x128xf32>
    %c0_17 = arith.constant 0 : index
    %c0_18 = arith.constant 0 : index
    %20 = vector.load %arg8[%c0_17, %c0_18] : memref<8x128xf32, #tpu.memory_space<vmem>>, vector<8x128xf32>
    tpu.vector_store %arg8[%c0_17, %c0_18], %19 {strides = array<i32>} : memref<8x128xf32, #tpu.memory_space<vmem>>, vector<8x128xf32>,
    return
  }
  func.func @transform_0(%arg0: i32) -> (i32, i32) {
    %c0_i32 = arith.constant 0 : i32
    %c0_i32_0 = arith.constant 0 : i32
    return %arg0, %c0_i32 : i32, i32
  }
  func.func @transform_1(%arg0: i32) -> (i32, i32) {
    %c0_i32 = arith.constant 0 : i32
    %c0_i32_0 = arith.constant 0 : i32
    %c0_i32_1 = arith.constant 0 : i32
    return %c0_i32, %c0_i32_0 : i32, i32
  }
  func.func @transform_2(%arg0: i32) -> (i32, i32) {
    %c0_i32 = arith.constant 0 : i32
    %c0_i32_0 = arith.constant 0 : i32
    %c0_i32_1 = arith.constant 0 : i32
    return %c0_i32, %c0_i32_0 : i32, i32
  }
  func.func @transform_3(%arg0: i32) -> (i32, i32) {
    %c0_i32 = arith.constant 0 : i32
    %c0_i32_0 = arith.constant 0 : i32
    %c0_i32_1 = arith.constant 0 : i32
    return %c0_i32, %c0_i32_0 : i32, i32
  }
  func.func @transform_4(%arg0: i32) -> (i32, i32) {
    %c0_i32 = arith.constant 0 : i32
    %c0_i32_0 = arith.constant 0 : i32
    %c0_i32_1 = arith.constant 0 : i32
    return %c0_i32, %c0_i32_0 : i32, i32
  }
  func.func @transform_5(%arg0: i32) -> (i32, i32) {
    %c0_i32 = arith.constant 0 : i32
    %c0_i32_0 = arith.constant 0 : i32
    %c0_i32_1 = arith.constant 0 : i32
    return %c0_i32, %c0_i32_0 : i32, i32
  }
  func.func @transform_6(%arg0: i32) -> (i32, i32) {
    %c0_i32 = arith.constant 0 : i32
    %c0_i32_0 = arith.constant 0 : i32
    %c0_i32_1 = arith.constant 0 : i32
    return %c0_i32, %c0_i32_0 : i32, i32
  }
  func.func @transform_7(%arg0: i32) -> (i32, i32) {
    %c0_i32 = arith.constant 0 : i32
    %c0_i32_0 = arith.constant 0 : i32
    return %arg0, %c0_i32 : i32, i32
  }
}

</mosaic_0001>

<bundles_post_ra>
// kernel: dqn_forward.1
= control target key start
LH: loop header
LB: loop body
LE: loop exit
PB: predicated region body
PF: predicated region fallthrough
CT: control target
= control target key end

     0   :  { %v431_v0 = vmov 0.0   ;;  %vm432_vm0 = vmmov 0   ;;  %vm38_vm1 = vcmask 261120   ;;  %s638_s1 = inlined_call_operand.vmem [shape: f32[32,128], index: 1, kind: input, shape index: {}]   ;;  %s639_s3 = inlined_call_operand.vmem [shape: f32[128,128], index: 3, kind: input, shape index: {}]   ;;  %s640_s0 = inlined_call_operand.vmem [shape: f32[8,32], index: 0, kind: input, shape index: {}]   ;;  %s641_s5 = inlined_call_operand.vmem [shape: f32[128,128], index: 5, kind: input, shape index: {}]   ;;  %s642_s2 = inlined_call_operand.vmem [shape: f32[1,128], index: 2, kind: input, shape index: {}]   ;;  %s643_s4 = inlined_call_operand.vmem [shape: f32[1,128], index: 4, kind: input, shape index: {}]   ;;  %s644_s6 = inlined_call_operand.vmem [shape: f32[1,128], index: 6, kind: input, shape index: {}]   ;;  %s645_s7 = inlined_call_operand.vmem [shape: f32[8,128], index: 7, kind: output, shape index: {}]  }
   0x1   :  { %348 = vmatprep.subr.mxu0 %v431_v0  ;;  %v30_v1 = vld [vmem:[%s638_s1 + $0x18] sm:$0xff]  ;;  %v29_v2 = vld [vmem:[%s638_s1 + $0x10] sm:$0xff]  ;;  %356 = vmatprep.mubr.msk.f32.mxu0 %vm432_vm0, %v431_v0  ;;  %v28_v4 = vld [vmem:[%s638_s1 + $0x8] sm:$0xff] }
   0x2   :  { %349 = vmatpush3.msra.mxu0 %v30_v1  ;;  %359 = vmatprep.subr.mxu1 %v431_v0  ;;  %v128_v3 = vld [vmem:[%s639_s3 + $0x78] sm:$0xff]  ;;  %v127_v5 = vld [vmem:[%s639_s3 + $0x70] sm:$0xff]  ;;  %v126_v6 = vld [vmem:[%s639_s3 + $0x68] sm:$0xff] }
   0x3   :  { %350 = vmatprep.subr.mxu0 %v431_v0  ;;  %360 = vmatpush3.msra.mxu1 %v128_v3  ;;  %v27_v7 = vld [vmem:[%s638_s1] sm:$0xff]  ;;  %v124_v10 = vld [vmem:[%s639_s3 + $0x58] sm:$0xff]  ;;  %v123_v11 = vld [vmem:[%s639_s3 + $0x50] sm:$0xff] }
   0x4   :  { %351 = vmatpush3.msra.mxu0 %v29_v2  ;;  %361 = vmatprep.subr.mxu1 %v431_v0  ;;  %v26_v8 = vld [vmem:[%s640_s0] sm:$0xff]  ;;  %v122_v12 = vld [vmem:[%s639_s3 + $0x48] sm:$0xff]  ;;  %v120_v14 = vld [vmem:[%s639_s3 + $0x38] sm:$0xff] }
   0x5   :  { %352 = vmatprep.subr.mxu0 %v431_v0  ;;  %362 = vmatpush3.msra.mxu1 %v127_v5  ;;  %v125_v9 = vld [vmem:[%s639_s3 + $0x60] sm:$0xff]  ;;  %v119_v15 = vld [vmem:[%s639_s3 + $0x30] sm:$0xff]  ;;  %v118_v16 = vld [vmem:[%s639_s3 + $0x28] sm:$0xff] }
   0x6   :  { %353 = vmatpush3.msra.mxu0 %v28_v4  ;;  %363 = vmatprep.subr.mxu1 %v431_v0  ;;  %v121_v13 = vld [vmem:[%s639_s3 + $0x40] sm:$0xff]  ;;  %v116_v18 = vld [vmem:[%s639_s3 + $0x18] sm:$0xff]  ;;  %v115_v19 = vld [vmem:[%s639_s3 + $0x10] sm:$0xff] }
   0x7   :  { %354 = vmatprep.subr.mxu0 %v431_v0  ;;  %364 = vmatpush3.msra.mxu1 %v126_v6  ;;  %v117_v17 = vld [vmem:[%s639_s3 + $0x20] sm:$0xff]  ;;  %v114_v20 = vld [vmem:[%s639_s3 + $0x8] sm:$0xff]  ;;  %v222_v22 = vld [vmem:[%s641_s5 + $0x78] sm:$0xff] }
   0x8   :  { %355 = vmatpush3.msra.mxu0 %v27_v7  ;;  %365 = vmatprep.subr.mxu1 %v431_v0  ;;  %v113_v21 = vld [vmem:[%s639_s3] sm:$0xff]  ;;  %v221_v23 = vld [vmem:[%s641_s5 + $0x70] sm:$0xff]  ;;  %v220_v24 = vld [vmem:[%s641_s5 + $0x68] sm:$0xff] }
   0x9   :  { %357 = vmatmul.mubr.msk.f32.vlgmr.msra.gmra.mxu0 %vm38_vm1, %v26_v8  ;;  %366 = vmatpush3.msra.mxu1 %v125_v9  ;;  %v219_v25 = vld [vmem:[%s641_s5 + $0x60] sm:$0xff]  ;;  %v218_v26 = vld [vmem:[%s641_s5 + $0x58] sm:$0xff]  ;;  %v217_v27 = vld [vmem:[%s641_s5 + $0x50] sm:$0xff] }
   0xa   :  { %367 = vmatprep.subr.mxu1 %v431_v0  ;;  %391 = vmatprep.mubr.msk.f32.mxu1 %vm432_vm0, %v431_v0  ;;  %v216_v28 = vld [vmem:[%s641_s5 + $0x48] sm:$0xff]  ;;  %v215_v29 = vld [vmem:[%s641_s5 + $0x40] sm:$0xff]  ;;  %v214_v30 = vld [vmem:[%s641_s5 + $0x38] sm:$0xff] }
   0xb   :  { %368 = vmatpush3.msra.mxu1 %v124_v10  ;;  %394 = vmatprep.subr.mxu0 %v431_v0  ;;  %v213_v31 = vld [vmem:[%s641_s5 + $0x30] sm:$0xff]  ;;  %v212_v32 = vld [vmem:[%s641_s5 + $0x28] sm:$0xff]  ;;  %v211_v33 = vld [vmem:[%s641_s5 + $0x20] sm:$0xff] }
   0xc   :  { %369 = vmatprep.subr.mxu1 %v431_v0  ;;  %426 = vmatprep.mubr.msk.f32.mxu0 %vm432_vm0, %v431_v0  ;;  %v210_v34 = vld [vmem:[%s641_s5 + $0x18] sm:$0xff]  ;;  %v305_v35 = vld [vmem:[%s642_s2] ss:$0 sm:$0xff]  ;;  %v209_v40 = vld [vmem:[%s641_s5 + $0x10] sm:$0xff] }
   0xd   :  { %370 = vmatpush3.msra.mxu1 %v123_v11  ;;  %395 = vmatpush3.msra.mxu0 %v222_v22  ;;  %v208_v41 = vld [vmem:[%s641_s5 + $0x8] sm:$0xff]  ;;  %v207_v42 = vld [vmem:[%s641_s5] sm:$0xff] }
   0xe   :  { %371 = vmatprep.subr.mxu1 %v431_v0  ;;  %396 = vmatprep.subr.mxu0 %v431_v0  ;;  %v307_v43 = vld [vmem:[%s643_s4] ss:$0 sm:$0xff] }
   0xf   :  { %372 = vmatpush3.msra.mxu1 %v122_v12  ;;  %397 = vmatpush3.msra.mxu0 %v221_v23  ;;  %v308_v48 = vld [vmem:[%s644_s6] ss:$0 sm:$0xff] }
  0x10   :  { %373 = vmatprep.subr.mxu1 %v431_v0  ;;  %398 = vmatprep.subr.mxu0 %v431_v0 }
  0x11   :  { %374 = vmatpush3.msra.mxu1 %v121_v13  ;;  %399 = vmatpush3.msra.mxu0 %v220_v24 }
  0x12   :  { %375 = vmatprep.subr.mxu1 %v431_v0  ;;  %400 = vmatprep.subr.mxu0 %v431_v0 }
  0x13   :  { %376 = vmatpush3.msra.mxu1 %v120_v14  ;;  %401 = vmatpush3.msra.mxu0 %v219_v25 }
  0x14   :  { %377 = vmatprep.subr.mxu1 %v431_v0  ;;  %402 = vmatprep.subr.mxu0 %v431_v0 }
  0x15   :  { %378 = vmatpush3.msra.mxu1 %v119_v15  ;;  %403 = vmatpush3.msra.mxu0 %v218_v26 }
  0x16   :  { %379 = vmatprep.subr.mxu1 %v431_v0  ;;  %404 = vmatprep.subr.mxu0 %v431_v0 }
  0x17   :  { %380 = vmatpush3.msra.mxu1 %v118_v16  ;;  %405 = vmatpush3.msra.mxu0 %v217_v27 }
  0x18   :  { %381 = vmatprep.subr.mxu1 %v431_v0  ;;  %406 = vmatprep.subr.mxu0 %v431_v0 }
  0x19   :  { %382 = vmatpush3.msra.mxu1 %v117_v17  ;;  %407 = vmatpush3.msra.mxu0 %v216_v28 }
  0x1a   :  { %383 = vmatprep.subr.mxu1 %v431_v0  ;;  %408 = vmatprep.subr.mxu0 %v431_v0 }
  0x1b   :  { %384 = vmatpush3.msra.mxu1 %v116_v18  ;;  %409 = vmatpush3.msra.mxu0 %v215_v29 }
  0x1c   :  { %385 = vmatprep.subr.mxu1 %v431_v0  ;;  %410 = vmatprep.subr.mxu0 %v431_v0 }
  0x1d   :  { %386 = vmatpush3.msra.mxu1 %v115_v19  ;;  %411 = vmatpush3.msra.mxu0 %v214_v30 }
  0x1e   :  { %387 = vmatprep.subr.mxu1 %v431_v0  ;;  %412 = vmatprep.subr.mxu0 %v431_v0 }
  0x1f   :  { %388 = vmatpush3.msra.mxu1 %v114_v20  ;;  %413 = vmatpush3.msra.mxu0 %v213_v31 }
  0x20   :  { %389 = vmatprep.subr.mxu1 %v431_v0  ;;  %414 = vmatprep.subr.mxu0 %v431_v0 }
  0x21   :  { %390 = vmatpush3.msra.mxu1 %v113_v21  ;;  %415 = vmatpush3.msra.mxu0 %v212_v32 }
  0x22   :  { %416 = vmatprep.subr.mxu0 %v431_v0 }
  0x23   :  { %417 = vmatpush3.msra.mxu0 %v211_v33 }
  0x24   :  { %418 = vmatprep.subr.mxu0 %v431_v0 }
  0x25   :  { %419 = vmatpush3.msra.mxu0 %v210_v34 }
  0x26   :  { %420 = vmatprep.subr.mxu0 %v431_v0 }
  0x27   :  { %421 = vmatpush3.msra.mxu0 %v209_v40 }
  0x28   :  { %422 = vmatprep.subr.mxu0 %v431_v0 }
  0x29   :  { %423 = vmatpush3.msra.mxu0 %v208_v41 }
  0x2a   :  { %424 = vmatprep.subr.mxu0 %v431_v0 }
  0x2b   :  { %425 = vmatpush3.msra.mxu0 %v207_v42 }
  0xc9   :  { %v108_v36 = vpop.f32.mrf.mxu0 }
  0xca   :  { %v109_v37 = vadd.f32 %v305_v35, %v108_v36 }
  0xcb   :  { %v358_v38 = vpop.f32.mrf.mxu0 }
  0xcc   :  { %v112_v39 = vmax.f32 %v109_v37, 0.0 }
  0xce   :  { %392 = vmatmul.mubr.f32.vlgmr.msra.gmra.mxu1 %v112_v39 }
 0x18e   :  { %v202_v44 = vpop.f32.mrf.mxu1 }
 0x18f   :  { %v203_v45 = vadd.f32 %v307_v43, %v202_v44 }
 0x190   :  { %v393_v46 = vpop.f32.mrf.mxu1 }
 0x191   :  { %v206_v47 = vmax.f32 %v203_v45, 0.0 }
 0x193   :  { %427 = vmatmul.mubr.f32.vlgmr.msra.gmra.mxu0 %v206_v47 }
 0x253   :  { %v296_v49 = vpop.f32.mrf.mxu0 }
 0x254   :  { %v297_v50 = vadd.f32 %v308_v48, %v296_v49 }
 0x255   :  { %v428_v51 = vpop.f32.mrf.mxu0 }
 0x256   :  { %300 = vst [vmem:[%s645_s7] sm:$0xff] %v297_v50 }

</bundles_post_ra>
